<compile_context>
chip_gen: v7x
topology: tpu7x:2x2x1
jax: 0.10.0
libtpu: 0.0.40
codegen_flags: <defaults>
</compile_context>

<pallas_src>
import math
import functools

import jax
import jax.numpy as jnp
from jax.experimental import pallas as pl
from jax.experimental.pallas import tpu as pltpu


def _round_up(x, m):
    return ((x + m - 1) // m) * m


def _vmem_budget_bytes():
    """Generation-aware scoped-VMEM budget (leave ~25% headroom; cap at ~100 MiB)."""
    try:
        info = pltpu.get_tpu_info()
        cap = getattr(info, "vmem_capacity_bytes", None) or getattr(info, "vmem_bytes", None)
        if cap:
            return int(min(cap * 3 // 4, 100 * 1024 * 1024))
    except Exception:
        pass
    return 48 * 1024 * 1024


def _default_query_block(vmem_budget):
    # v7x (64 MiB VMEM/TC -> ~48 MiB budget): TQ=128 halves the f32 (H,TQ,N2) score
    # working set; v5e/v6e (128 MiB): TQ=256 amortizes per-grid-step overhead.
    return 128 if vmem_budget <= 48 * 1024 * 1024 else 256


def _mha_kernel(q_ref, kp_ref, vp_ref, mask_ref,
                wq_ref, bq_ref, wo_ref, bo_ref,
                out_ref, *rest, compute_dtype):
    attn_ref = rest[0] if rest else None

    tq = q_ref.shape[1]
    c = q_ref.shape[2]
    h = kp_ref.shape[1]
    d = kp_ref.shape[3]

    # --- Q projection for this query tile (1/sqrt(C) already folded into wq/bq).
    q_in = q_ref[0].astype(compute_dtype)                                  # (TQ, C)
    qp = jnp.dot(q_in, wq_ref[...], preferred_element_type=jnp.float32) + bq_ref[...]
    qh = jnp.swapaxes(qp.reshape(tq, h, d), 0, 1).astype(compute_dtype)    # (H, TQ, D)

    # --- scores for all heads in one batched dot_general: (H, TQ, N2)
    s = jnp.einsum('hqd,hkd->hqk', qh, kp_ref[0],
                   preferred_element_type=jnp.float32)

    # --- additive mask bias, computed once and shared by every head.
    mbias = jnp.where(mask_ref[0] == 0.0, -1e30, 0.0)                      # (TQ, N2)
    s = s + mbias[None, :, :]

    # --- softmax in f32; the divide goes to the EUP as an approx reciprocal.
    s_max = jnp.max(s, axis=-1, keepdims=True)
    e = jnp.exp(s - s_max)
    w = e * pl.reciprocal(jnp.sum(e, axis=-1, keepdims=True), approx=True)

    if attn_ref is not None:
        attn_ref[0] = w.astype(attn_ref.dtype)

    # --- context for all heads in one batched dot_general: (H, TQ, D)
    ctx = jnp.einsum('hqk,hkd->hqd', w.astype(compute_dtype), vp_ref[0],
                     preferred_element_type=jnp.float32)

    # --- output projection with the head merge folded into the contraction:
    #     per-head (TQ,D)@(D,C) batched matmul, then a head-sum (no XLU relayout).
    out_h = jnp.einsum('hqd,hdc->hqc', ctx.astype(compute_dtype), wo_ref[...],
                       preferred_element_type=jnp.float32)                 # (H, TQ, C)
    out = jnp.sum(out_h, axis=0) + bo_ref[...]                             # (TQ, C)
    out_ref[0] = out.astype(out_ref.dtype)


def multihead_attention(q, k, v, params, *, head_num,
                        attention_mask=None,
                        query_block=None,
                        compute_dtype=jnp.bfloat16,
                        need_weights=False,
                        attn_weights_dtype=jnp.bfloat16):
    """Forward pass of the PyTorch MultiheadAttention module.

    Returns (result, attention_weight) if need_weights else result.
    Default feeds the MXU with bf16 operands (f32 accumulation, f32 softmax); pass
    compute_dtype=jnp.float32 for strict f32 operands.
    """
    B, N1, C = q.shape
    _, N2, _ = k.shape
    assert C % head_num == 0
    H = head_num
    D = C // H
    scale = math.sqrt(C)  # module scales by sqrt(hidden_dim), not sqrt(head_dim)

    cd = jnp.dtype(compute_dtype)
    vmem_budget = _vmem_budget_bytes()

    wq, bq, wk, bk, wv, bv, wo, bo = params

    # nn.Linear stores W as (out, in); pre-transpose once on the host side so every matmul
    # is x @ W with lane-aligned MXU operands, fold the 1/sqrt(C) score scaling into the Q
    # projection, and reshape wo to (H, D, C) so the head merge happens inside the MXU
    # contraction rather than via an in-kernel relayout.
    wq_t = (wq.T / scale).astype(cd)                         # (C, C)
    wo_h = wo.T.reshape(H, D, C).astype(cd)                  # (H, D, C)
    bq_s = (bq / scale).reshape(1, C).astype(jnp.float32)
    bo_r = bo.reshape(1, C).astype(jnp.float32)

    # --- K/V projections hoisted out of the kernel: plain XLA matmuls (bf16 MXU operands,
    #     f32 accumulation), head-split to (B, H, N2, D) in compute dtype.
    kp = jnp.dot(k.astype(cd), wk.T.astype(cd), preferred_element_type=jnp.float32) + bk
    vp = jnp.dot(v.astype(cd), wv.T.astype(cd), preferred_element_type=jnp.float32) + bv
    kp = kp.reshape(B, N2, H, D).transpose(0, 2, 1, 3).astype(cd)
    vp = vp.reshape(B, N2, H, D).transpose(0, 2, 1, 3).astype(cd)

    if attention_mask is None:
        attention_mask = jnp.ones((B, N1, N2), dtype=jnp.float32)
    attention_mask = attention_mask.astype(jnp.float32)

    # --- query-tile selection + padding (never fall back to a whole-sequence tile).
    tq = query_block if query_block is not None else _default_query_block(vmem_budget)
    tq = max(8, (min(tq, _round_up(N1, 8)) // 8) * 8)
    n1p = _round_up(N1, tq)
    q_p = q
    mask_p = attention_mask
    if n1p != N1:
        q_p = jnp.pad(q, ((0, 0), (0, n1p - N1), (0, 0)))
        mask_p = jnp.pad(attention_mask, ((0, 0), (0, n1p - N1), (0, 0)), constant_values=1.0)
    n_q_tiles = n1p // tq

    kernel = functools.partial(_mha_kernel, compute_dtype=cd)

    out_shapes = [jax.ShapeDtypeStruct((B, n1p, C), q.dtype)]
    out_specs = [pl.BlockSpec((1, tq, C), lambda b, qi: (b, qi, 0))]
    if need_weights:
        out_shapes.append(jax.ShapeDtypeStruct((B, H, n1p, N2), attn_weights_dtype))
        out_specs.append(pl.BlockSpec((1, H, tq, N2), lambda b, qi: (b, 0, qi, 0)))

    inputs = (q_p, kp, vp, mask_p, wq_t, bq_s, wo_h, bo_r)

    # Advisory cost estimate so XLA can overlap the kernel with the hoisted K/V projection.
    flops = 4 * B * n1p * C * (C + N2)
    transcendentals = B * H * n1p * N2
    bytes_accessed = sum(int(a.size) * a.dtype.itemsize for a in inputs)
    bytes_accessed += B * n1p * C * jnp.dtype(q.dtype).itemsize
    if need_weights:
        bytes_accessed += B * H * n1p * N2 * jnp.dtype(attn_weights_dtype).itemsize

    results = pl.pallas_call(
        kernel,
        out_shape=tuple(out_shapes),
        grid_spec=pltpu.PrefetchScalarGridSpec(
            num_scalar_prefetch=0,
            grid=(B, n_q_tiles),
            in_specs=[
                pl.BlockSpec((1, tq, C), lambda b, qi: (b, qi, 0)),        # q
                pl.BlockSpec((1, H, N2, D), lambda b, qi: (b, 0, 0, 0)),   # projected K
                pl.BlockSpec((1, H, N2, D), lambda b, qi: (b, 0, 0, 0)),   # projected V
                pl.BlockSpec((1, tq, N2), lambda b, qi: (b, qi, 0)),       # attention_mask
                pl.BlockSpec((C, C), lambda b, qi: (0, 0)),                # wq (scaled)
                pl.BlockSpec((1, C), lambda b, qi: (0, 0)),                # bq (scaled)
                pl.BlockSpec((H, D, C), lambda b, qi: (0, 0, 0)),          # wo (head-split)
                pl.BlockSpec((1, C), lambda b, qi: (0, 0)),                # bo
            ],
            out_specs=tuple(out_specs),
        ),
        compiler_params=pltpu.CompilerParams(
            # No cross-grid-step state anymore (K/V projection hoisted), so both axes are
            # parallel -> v7x can shard query tiles across its two TensorCores even at B==1.
            dimension_semantics=("parallel", "parallel"),
            vmem_limit_bytes=vmem_budget,
        ),
        cost_estimate=pl.CostEstimate(flops=flops,
                                      transcendentals=transcendentals,
                                      bytes_accessed=bytes_accessed),
    )(*inputs)

    out = results[0][:, :N1, :]
    if need_weights:
        return out, results[1][:, :, :N1, :]
    return out


def _reference(q, k, v, params, head_num, attention_mask):
    """Pure-JAX replica of the PyTorch forward for validation."""
    wq, bq, wk, bk, wv, bv, wo, bo = params
    B, N1, C = q.shape
    _, N2, _ = k.shape
    D = C // head_num
    scale = math.sqrt(C)
    qp = (q @ wq.T + bq).reshape(B, N1, head_num, D).transpose(0, 2, 1, 3)
    kp = (k @ wk.T + bk).reshape(B, N2, head_num, D).transpose(0, 2, 3, 1)
    vp = (v @ wv.T + bv).reshape(B, N2, head_num, D).transpose(0, 2, 1, 3)
    s = qp @ kp / scale
    m = attention_mask[:, None, :, :].astype(jnp.float32)
    s = jnp.where(m == 0.0, -jnp.inf, s)
    w = jax.nn.softmax(s, axis=-1)
    res = (w @ vp).transpose(0, 2, 1, 3).reshape(B, N1, C)
    res = res @ wo.T + bo
    return res, w


if __name__ == "__main__":
    # N1=14 deliberately not a multiple of the query tile -> exercises the padding path.
    B, N1, N2, C, H = 2, 14, 8, 32, 4

    key = jax.random.PRNGKey(0)
    keys = jax.random.split(key, 11)
    q = jax.random.normal(keys[0], (B, N1, C), jnp.float32)
    k = jax.random.normal(keys[1], (B, N2, C), jnp.float32)
    v = jax.random.normal(keys[2], (B, N2, C), jnp.float32)

    # deterministic synthetic Linear params (W: (out, in), b: (out,))
    init = 1.0 / math.sqrt(C)
    params = (
        jax.random.uniform(keys[3], (C, C), jnp.float32, -init, init),   # wq
        jax.random.uniform(keys[4], (C,), jnp.float32, -init, init),     # bq
        jax.random.uniform(keys[5], (C, C), jnp.float32, -init, init),   # wk
        jax.random.uniform(keys[6], (C,), jnp.float32, -init, init),     # bk
        jax.random.uniform(keys[7], (C, C), jnp.float32, -init, init),   # wv
        jax.random.uniform(keys[8], (C,), jnp.float32, -init, init),     # bv
        jax.random.uniform(keys[9], (C, C), jnp.float32, -init, init),   # wo
        jax.random.uniform(keys[10], (C,), jnp.float32, -init, init),    # bo
    )

    # mask: last two key positions are masked out for every query
    attention_mask = jnp.ones((B, N1, N2), jnp.float32).at[:, :, N2 - 2:].set(0.0)

    ref_out, ref_attn = _reference(q, k, v, params, H, attention_mask)

    # Default fast path: bf16 MXU operands, no attention-weights writeback; query_block=8
    # exercises multi-tile + N1-padding (14 -> 16).
    out_fast = multihead_attention(q, k, v, params, head_num=H,
                                   attention_mask=attention_mask, query_block=8)
    jax.block_until_ready(out_fast)
    assert out_fast.shape == (B, N1, C)
    assert jnp.allclose(out_fast, ref_out, atol=6e-2, rtol=6e-2), "bf16 result mismatch"

    # f32 verification path with the attention weights returned.
    out_f32, attn = multihead_attention(q, k, v, params, head_num=H,
                                        attention_mask=attention_mask, query_block=8,
                                        compute_dtype=jnp.float32,
                                        need_weights=True,
                                        attn_weights_dtype=jnp.float32)
    jax.block_until_ready((out_f32, attn))
    assert attn.shape == (B, H, N1, N2)
    assert jnp.allclose(out_f32, ref_out, atol=2e-3, rtol=2e-3), "f32 result mismatch"
    assert jnp.allclose(attn, ref_attn, atol=2e-3, rtol=2e-3), "attention weight mismatch"

    print("KERNEL_OK")
</pallas_src>

<mosaic_0001>
module attributes {stable_mosaic.version = 11 : i64} {
  func.func @_mha_kernel(%arg0: i32, %arg1: i32, %arg2: memref<1x8x32xf32, #tpu.memory_space<vmem>>, %arg3: memref<1x4x8x8xbf16, #tpu.memory_space<vmem>>, %arg4: memref<1x4x8x8xbf16, #tpu.memory_space<vmem>>, %arg5: memref<1x8x8xf32, #tpu.memory_space<vmem>>, %arg6: memref<32x32xbf16, #tpu.memory_space<vmem>>, %arg7: memref<1x32xf32, #tpu.memory_space<vmem>>, %arg8: memref<4x8x32xbf16, #tpu.memory_space<vmem>>, %arg9: memref<1x32xf32, #tpu.memory_space<vmem>>, %arg10: memref<1x8x32xf32, #tpu.memory_space<vmem>>) attributes {dimension_semantics = [#tpu.dimension_semantics<parallel>, #tpu.dimension_semantics<parallel>], iteration_bounds = array<i64: 2, 2>, scalar_prefetch = 0 : i64, scratch_operands = 0 : i64, tpu.core_type = #tpu.core_type<tc>, window_params = [{transform_indices = @transform_0, window_bounds = array<i64: 1, 8, 32>}, {transform_indices = @transform_1, window_bounds = array<i64: 1, 4, 8, 8>}, {transform_indices = @transform_2, window_bounds = array<i64: 1, 4, 8, 8>}, {transform_indices = @transform_3, window_bounds = array<i64: 1, 8, 8>}, {pipeline_mode = #tpu.pipeline_mode<synchronous>, transform_indices = @transform_4, window_bounds = array<i64: 32, 32>}, {pipeline_mode = #tpu.pipeline_mode<synchronous>, transform_indices = @transform_5, window_bounds = array<i64: 1, 32>}, {pipeline_mode = #tpu.pipeline_mode<synchronous>, transform_indices = @transform_6, window_bounds = array<i64: 4, 8, 32>}, {pipeline_mode = #tpu.pipeline_mode<synchronous>, transform_indices = @transform_7, window_bounds = array<i64: 1, 32>}, {transform_indices = @transform_8, window_bounds = array<i64: 1, 8, 32>}]} {
    %c0 = arith.constant 0 : index
    %c0_0 = arith.constant 0 : index
    %c0_1 = arith.constant 0 : index
    %0 = vector.load %arg2[%c0, %c0_0, %c0_1] : memref<1x8x32xf32, #tpu.memory_space<vmem>>, vector<1x8x32xf32>
    %1 = vector.shape_cast %0 : vector<1x8x32xf32> to vector<8x32xf32>
    %2 = arith.truncf %1 : vector<8x32xf32> to vector<8x32xbf16>
    %c0_2 = arith.constant 0 : index
    %c0_3 = arith.constant 0 : index
    %3 = vector.load %arg6[%c0_2, %c0_3] : memref<32x32xbf16, #tpu.memory_space<vmem>>, vector<32x32xbf16>
    %cst = arith.constant dense<0.000000e+00> : vector<8x32xf32>
    %4 = tpu.matmul %2, %3, %cst {dimension_numbers = #tpu.dot_dimension_numbers<[1], [0], [0], [1], [0, 0, 1, 1], [], []>} : vector<8x32xbf16>, vector<32x32xbf16>, vector<8x32xf32> -> vector<8x32xf32>
    %c0_4 = arith.constant 0 : index
    %c0_5 = arith.constant 0 : index
    %5 = vector.load %arg7[%c0_4, %c0_5] : memref<1x32xf32, #tpu.memory_space<vmem>>, vector<1x32xf32>
    %6 = vector.broadcast %5 : vector<1x32xf32> to vector<8x32xf32>
    %7 = arith.addf %4, %6 : vector<8x32xf32>
    %8 = vector.shape_cast %7 : vector<8x32xf32> to vector<8x4x8xf32>
    %9 = tpu.transpose %8, [1, 0, 2] : vector<8x4x8xf32> -> vector<4x8x8xf32>
    %10 = arith.truncf %9 : vector<4x8x8xf32> to vector<4x8x8xbf16>
    %c0_6 = arith.constant 0 : index
    %c0_7 = arith.constant 0 : index
    %c0_8 = arith.constant 0 : index
    %c0_9 = arith.constant 0 : index
    %11 = vector.load %arg3[%c0_6, %c0_7, %c0_8, %c0_9] : memref<1x4x8x8xbf16, #tpu.memory_space<vmem>>, vector<1x4x8x8xbf16>
    %12 = vector.shape_cast %11 : vector<1x4x8x8xbf16> to vector<4x8x8xbf16>
    "tpu.trace_start"() <{level = 10 : i32, message = "hqd,hkd->hqk"}> : () -> ()
    %cst_10 = arith.constant dense<0.000000e+00> : vector<4x8x8xf32>
    %13 = tpu.matmul %10, %12, %cst_10 {dimension_numbers = #tpu.dot_dimension_numbers<[2], [2], [1], [1], [0, 0, 0, 1, 1, 1], [0], [0]>} : vector<4x8x8xbf16>, vector<4x8x8xbf16>, vector<4x8x8xf32> -> vector<4x8x8xf32>
    "tpu.trace_stop"() : () -> ()
    %c0_11 = arith.constant 0 : index
    %c0_12 = arith.constant 0 : index
    %c0_13 = arith.constant 0 : index
    %14 = vector.load %arg5[%c0_11, %c0_12, %c0_13] : memref<1x8x8xf32, #tpu.memory_space<vmem>>, vector<1x8x8xf32>
    %15 = vector.shape_cast %14 : vector<1x8x8xf32> to vector<8x8xf32>
    %cst_14 = arith.constant 0.000000e+00 : f32
    %16 = vector.broadcast %cst_14 : f32 to vector<8x8xf32>
    %17 = arith.cmpf oeq, %15, %16 : vector<8x8xf32>
    %cst_15 = arith.constant -1.000000e+30 : f32
    %cst_16 = arith.constant 0.000000e+00 : f32
    %18 = vector.broadcast %cst_15 : f32 to vector<8x8xf32>
    %19 = vector.broadcast %cst_16 : f32 to vector<8x8xf32>
    %20 = arith.select %17, %18, %19 : vector<8x8xi1>, vector<8x8xf32>
    %21 = vector.shape_cast %20 : vector<8x8xf32> to vector<1x8x8xf32>
    %22 = vector.broadcast %21 : vector<1x8x8xf32> to vector<4x8x8xf32>
    %23 = arith.addf %13, %22 : vector<4x8x8xf32>
    %cst_17 = arith.constant dense<0xFF800000> : vector<4x8xf32>
    %24 = vector.multi_reduction <maximumf>, %23, %cst_17 [2] : vector<4x8x8xf32> to vector<4x8xf32>
    %25 = vector.shape_cast %24 : vector<4x8xf32> to vector<4x8x1xf32>
    %26 = vector.broadcast %25 : vector<4x8x1xf32> to vector<4x8x8xf32>
    %27 = arith.subf %23, %26 : vector<4x8x8xf32>
    %28 = math.exp %27 : vector<4x8x8xf32>
    %cst_18 = arith.constant dense<0.000000e+00> : vector<4x8xf32>
    %29 = vector.multi_reduction <add>, %28, %cst_18 [2] : vector<4x8x8xf32> to vector<4x8xf32>
    %30 = vector.shape_cast %29 : vector<4x8xf32> to vector<4x8x1xf32>
    %31 = tpu.reciprocal %30 {approx = true} : vector<4x8x1xf32> -> vector<4x8x1xf32>
    %32 = vector.broadcast %31 : vector<4x8x1xf32> to vector<4x8x8xf32>
    %33 = arith.mulf %28, %32 : vector<4x8x8xf32>
    %34 = arith.truncf %33 : vector<4x8x8xf32> to vector<4x8x8xbf16>
    %c0_19 = arith.constant 0 : index
    %c0_20 = arith.constant 0 : index
    %c0_21 = arith.constant 0 : index
    %c0_22 = arith.constant 0 : index
    %35 = vector.load %arg4[%c0_19, %c0_20, %c0_21, %c0_22] : memref<1x4x8x8xbf16, #tpu.memory_space<vmem>>, vector<1x4x8x8xbf16>
    %36 = vector.shape_cast %35 : vector<1x4x8x8xbf16> to vector<4x8x8xbf16>
    "tpu.trace_start"() <{level = 10 : i32, message = "hqk,hkd->hqd"}> : () -> ()
    %cst_23 = arith.constant dense<0.000000e+00> : vector<4x8x8xf32>
    %37 = tpu.matmul %34, %36, %cst_23 {dimension_numbers = #tpu.dot_dimension_numbers<[2], [1], [1], [2], [0, 0, 0, 1, 1, 2], [0], [0]>} : vector<4x8x8xbf16>, vector<4x8x8xbf16>, vector<4x8x8xf32> -> vector<4x8x8xf32>
    "tpu.trace_stop"() : () -> ()
    %38 = arith.truncf %37 : vector<4x8x8xf32> to vector<4x8x8xbf16>
    %c0_24 = arith.constant 0 : index
    %c0_25 = arith.constant 0 : index
    %c0_26 = arith.constant 0 : index
    %39 = vector.load %arg8[%c0_24, %c0_25, %c0_26] : memref<4x8x32xbf16, #tpu.memory_space<vmem>>, vector<4x8x32xbf16>
    "tpu.trace_start"() <{level = 10 : i32, message = "hqd,hdc->hqc"}> : () -> ()
    %cst_27 = arith.constant dense<0.000000e+00> : vector<4x8x32xf32>
    %40 = tpu.matmul %38, %39, %cst_27 {dimension_numbers = #tpu.dot_dimension_numbers<[2], [1], [1], [2], [0, 0, 0, 1, 1, 2], [0], [0]>} : vector<4x8x8xbf16>, vector<4x8x32xbf16>, vector<4x8x32xf32> -> vector<4x8x32xf32>
    "tpu.trace_stop"() : () -> ()
    %cst_28 = arith.constant dense<0.000000e+00> : vector<8x32xf32>
    %41 = vector.multi_reduction <add>, %40, %cst_28 [0] : vector<4x8x32xf32> to vector<8x32xf32>
    %c0_29 = arith.constant 0 : index
    %c0_30 = arith.constant 0 : index
    %42 = vector.load %arg9[%c0_29, %c0_30] : memref<1x32xf32, #tpu.memory_space<vmem>>, vector<1x32xf32>
    %43 = vector.broadcast %42 : vector<1x32xf32> to vector<8x32xf32>
    %44 = arith.addf %41, %43 : vector<8x32xf32>
    %c0_31 = arith.constant 0 : index
    %c0_32 = arith.constant 0 : index
    %c0_33 = arith.constant 0 : index
    %45 = vector.load %arg10[%c0_31, %c0_32, %c0_33] : memref<1x8x32xf32, #tpu.memory_space<vmem>>, vector<1x8x32xf32>
    %46 = vector.shape_cast %45 : vector<1x8x32xf32> to vector<8x32xf32>
    %47 = vector.shape_cast %44 : vector<8x32xf32> to vector<1x8x32xf32>
    tpu.vector_store %arg10[%c0_31, %c0_32, %c0_33], %47 {strides = array<i32>} : memref<1x8x32xf32, #tpu.memory_space<vmem>>, vector<1x8x32xf32>,
    return
  }
  func.func @transform_0(%arg0: i32, %arg1: i32) -> (i32, i32, i32) {
    %c0_i32 = arith.constant 0 : i32
    %c0_i32_0 = arith.constant 0 : i32
    return %arg0, %arg1, %c0_i32 : i32, i32, i32
  }
  func.func @transform_1(%arg0: i32, %arg1: i32) -> (i32, i32, i32, i32) {
    %c0_i32 = arith.constant 0 : i32
    %c0_i32_0 = arith.constant 0 : i32
    %c0_i32_1 = arith.constant 0 : i32
    %c0_i32_2 = arith.constant 0 : i32
    return %arg0, %c0_i32, %c0_i32_0, %c0_i32_1 : i32, i32, i32, i32
  }
  func.func @transform_2(%arg0: i32, %arg1: i32) -> (i32, i32, i32, i32) {
    %c0_i32 = arith.constant 0 : i32
    %c0_i32_0 = arith.constant 0 : i32
    %c0_i32_1 = arith.constant 0 : i32
    %c0_i32_2 = arith.constant 0 : i32
    return %arg0, %c0_i32, %c0_i32_0, %c0_i32_1 : i32, i32, i32, i32
  }
  func.func @transform_3(%arg0: i32, %arg1: i32) -> (i32, i32, i32) {
    %c0_i32 = arith.constant 0 : i32
    %c0_i32_0 = arith.constant 0 : i32
    return %arg0, %arg1, %c0_i32 : i32, i32, i32
  }
  func.func @transform_4(%arg0: i32, %arg1: i32) -> (i32, i32) {
    %c0_i32 = arith.constant 0 : i32
    %c0_i32_0 = arith.constant 0 : i32
    %c0_i32_1 = arith.constant 0 : i32
    return %c0_i32, %c0_i32_0 : i32, i32
  }
  func.func @transform_5(%arg0: i32, %arg1: i32) -> (i32, i32) {
    %c0_i32 = arith.constant 0 : i32
    %c0_i32_0 = arith.constant 0 : i32
    %c0_i32_1 = arith.constant 0 : i32
    return %c0_i32, %c0_i32_0 : i32, i32
  }
  func.func @transform_6(%arg0: i32, %arg1: i32) -> (i32, i32, i32) {
    %c0_i32 = arith.constant 0 : i32
    %c0_i32_0 = arith.constant 0 : i32
    %c0_i32_1 = arith.constant 0 : i32
    %c0_i32_2 = arith.constant 0 : i32
    return %c0_i32, %c0_i32_0, %c0_i32_1 : i32, i32, i32
  }
  func.func @transform_7(%arg0: i32, %arg1: i32) -> (i32, i32) {
    %c0_i32 = arith.constant 0 : i32
    %c0_i32_0 = arith.constant 0 : i32
    %c0_i32_1 = arith.constant 0 : i32
    return %c0_i32, %c0_i32_0 : i32, i32
  }
  func.func @transform_8(%arg0: i32, %arg1: i32) -> (i32, i32, i32) {
    %c0_i32 = arith.constant 0 : i32
    %c0_i32_0 = arith.constant 0 : i32
    return %arg0, %arg1, %c0_i32 : i32, i32, i32
  }
}

</mosaic_0001>

<bundles_post_ra>
// kernel: tpu_custom_call.1
= control target key start
LH: loop header
LB: loop body
LE: loop exit
PB: predicated region body
PF: predicated region fallthrough
CT: control target
= control target key end

     0   :  { %s2396_s0 = inlined_call_operand.vmem [shape: f32[2,16,32], index: 0, kind: input, shape index: {}]   ;;  %s2397_s1 = inlined_call_operand.hbm [shape: bf16[2,4,8,8], index: 1, kind: input, shape index: {}]   ;;  %s2398_s2 = inlined_call_operand.hbm [shape: bf16[2,4,8,8], index: 2, kind: input, shape index: {}]   ;;  %s2399_s3 = inlined_call_operand.vmem [shape: f32[2,16,8], index: 3, kind: input, shape index: {}]   ;;  %s2400_s4 = inlined_call_operand.vmem [shape: bf16[32,32], index: 4, kind: input, shape index: {}]   ;;  %s2401_s5 = inlined_call_operand.vmem [shape: f32[1,32], index: 5, kind: input, shape index: {}]   ;;  %s2402_s6 = inlined_call_operand.vmem [shape: bf16[4,8,32], index: 6, kind: input, shape index: {}]   ;;  %s2403_s7 = inlined_call_operand.vmem [shape: f32[1,32], index: 7, kind: input, shape index: {}]   ;;  %s2404_s8 = inlined_call_operand.hbm [shape: f32[2,16,32], index: 8, kind: output, shape index: {}]  }
   0x1   :  { %2417 = sst [smem:[#allocation19_spill]] %s2397_s1 }
   0x2   :  { %2418 = sst [smem:[#allocation20_spill]] %s2404_s8 }
   0x3   :  { %13 = vsyncpa [#allocation3], 0 }
   0x4   :  { %15 = vsyncpa [#allocation3 + $0x1], 0 }
   0x5   :  { %16 = vsyncpa [#allocation6], 0 }
   0x6   :  { %18 = vsyncpa [#allocation6 + $0x1], 0 }
   0x7   :  { %19 = vsyncpa [#allocation4], 0 }
   0x8   :  { %21 = vsyncpa [#allocation4 + $0x1], 0  ;;  %s1985_s27 = smov 0   ;;  %s1987_s28 = smov 0  }
   0x9   :  { %s1989_s29 = smov 0   ;;  %s1991_s30 = smov 0  }
   0xa   :  { %s1993_s9 = smov 0   ;;  %s1995_s10 = smov 0  }
   0xb   :  { %s1997_s11 = smov 0   ;;  %s1999_s12 = smov 0  }
   0xc   :  { %s2001_s13 = smov 0   ;;  %s2003_s14 = smov 0  }
   0xd   :  { %s2005_s15 = smov 0  }
   0xe LB: > { %2419 = sst [smem:[#allocation11_spill]] %s1894_s29  ;;  %s1455_s16 = sadd.s32 4294967295, %s1926_s15   ;;  %s1926_s15 = sphi %s2005_s15, %s27_s15   ;;  %s1922_s14 = sphi %s2003_s14, %s2456_s14   ;;  %s1918_s13 = sphi %s2001_s13, %s2449_s13   ;;  %s1914_s12 = sphi %s1999_s12, %s2455_s12   ;;  %s1910_s11 = sphi %s1997_s11, %s2448_s11   ;;  %s1906_s10 = sphi %s1995_s10, %s2447_s10   ;;  %s1902_s9 = sphi %s1993_s9, %s2454_s9   ;;  %s1898_s30 = sphi %s1991_s30, %s2453_s30   ;;  %s1894_s29 = sphi %s1989_s29, %s2445_s29   ;;  %s1890_s28 = sphi %s1987_s28, %s2452_s28   ;;  %s1886_s27 = sphi %s1985_s27, %s2451_s27  }
   0xf   : > { %2420 = sst [smem:[#allocation12_spill]] %s1906_s10  ;;  %s1456_s17 = sadd.s32 4294967294, %s1926_s15  }
  0x10   : > { %2421 = sst [smem:[#allocation13_spill]] %s1918_s13  ;;  %s36_s18 = sadd.s32 1, %s1918_s13 }
  0x11   : > { %s39_s19 = sadd.s32 1, %s1922_s14  ;;  %p37_p0 = scmp.ge.s32.totalorder %s36_s18, 2 }
  0x12   : > { %s74_s20 = sadd.s32 1, %s1906_s10  ;;  %p81_p1 = scmp.ne.s32.totalorder %s1906_s10, %s1902_s9 }
  0x13   : > { %p82_p2 = scmp.eq.s32.totalorder %s1926_s15, 0  ;;  %s2458_s18 = smov (%p37_p0, %s36_s18), 0 }
  0x14   : > { %2422 = sst [smem:[#allocation14_spill]] %s2458_s18  ;;  %s2460_s19 = smov (!%p37_p0, %s39_s19), %s1922_s14 }
  0x15   : > { %p2049_p3 = por %p82_p2, %p81_p1  ;;  %p87_p4 = scmp.ne.s32.totalorder %s1902_s9, %s1898_s30 }
  0x16   : > { %p41_p5 = scmp.ge.s32.totalorder %s2460_s19, 2  ;;  %p88_p6 = scmp.eq.s32.totalorder %s1455_s16, 0 }
  0x17   : > { %s236_s22 = ssub.s32 %s1918_s13, %s2458_s18  ;;  %s240_s23 = sadd.s32 1, %s1894_s29 }
  0x18   : > { %s2462_s19 = smov (%p41_p5, %s2460_s19), 0  ;;  %p2059_p7 = por %p88_p6, %p87_p4 }
  0x19   : > { %2424 = sst [smem:[#allocation15_spill]] %s2462_s19  ;;  %p250_p8 = scmp.ne.s32.totalorder %s1894_s29, %s1890_s28 }
  0x1a   : > { %s2425_s24 = scalar_select %p2059_p7, 1, 0 }
  0x1b   : > { %s71_s25 = ssub.s32 %s1922_s14, %s2462_s19  ;;  %p251_p9 = scmp.eq.s32.totalorder %s1455_s16, 3 }
  0x1c   : > { %p72_p10 = scmp.eq.s32.totalorder %s71_s25, 0  ;;  %s237_s26 = sor.u32 %s236_s22, %s71_s25 }
  0x1d   : > { %p238_p11 = scmp.eq.s32.totalorder %s237_s26, 0  ;;  %p2067_p12 = por %p251_p9, %p250_p8 }
  0x1e   : > { %s2072_s18 = scalar_select %p72_p10, %s1906_s10, %s74_s20  }
  0x1f   : > { %s2426_s30 = scalar_select %p2067_p12, 1, 0 }
  0x20   : > { %2427 = sst [smem:[#allocation16_spill]] %s2072_s18  ;;  %p256_p13 = scmp.ne.s32.totalorder %s1890_s28, %s1886_s27 }
  0x21   : > { %s2075_s13 = scalar_select %p238_p11, %s1894_s29, %s240_s23  }
  0x22   : > { %p257_p0 = scmp.eq.s32.totalorder %s1456_s17, 3  ;;  %p1623_p1 = scmp.lt.s32.totalorder %s1926_s15, 4 }
  0x23   : > { %2428 = sst [smem:[#allocation17_spill]] %s2075_s13  ;;  %s2085_s16 = sand.u32 1, %s1906_s10  }
  0x24   : > { %p2080_p2 = por %p257_p0, %p256_p13  ;;  %s2409_s22 = sshll.u32 %s2085_s16, 4 }
  0x25   : > { %s2410_s25 = sshll.u32 %s1922_s14, 8  ;;  %s2431_s1 = sld [smem:[#allocation19_spill]] }
  0x26   : > { %s2429_s8 = scalar_select %p2080_p2, 1, 0 }
  0x27   : > { %s304_s17 = scalar_lea.vmem [#allocation2], %s2409_s22  ;;  %p2102_p4 = pnand %p1623_p1, %p2049_p3 }
  0x28   : > { %2430 = sst [smem:[#allocation18_spill]] %s2429_s8  ;;  %s311_s19 = sshll.u32 %s304_s17, 4  ;;  %s2098_s19 = int_to_ptr.vmem [resolvable:$true] %s311_s19 }
  0x29   : > { %p1742_p8 = pneg %p2102_p4 }
  0x2b   : > { %s2094_s23 = scalar_lea.hbm %s2431_s1, %s2410_s25  ;;  %s1745_s21 = scalar_lea.hbm %s2431_s1, 512 }
  0x2c   : > { %s1740_s20 = scalar_lea.hbm %s2094_s23, 256  ;;  %p1746_p3 = scmp.lt.u32.totalorder %s2094_s23, %s2431_s1 }
  0x2d   : > { %p1741_p6 = scmp.ne.s32.totalorder %s2094_s23, %s1740_s20  ;;  %p1747_p11 = scmp.lt.u32.totalorder %s1745_s21, %s1740_s20 }
  0x2e   : > { %p1749_p0 = scmp.lt.u32.totalorder %s1740_s20, %s2094_s23 }
  0x2f   : > { %p1743_p9 = pnand %p1742_p8, %p1741_p6  ;;  %p1748_p13 = por %p1747_p11, %p1746_p3 }
  0x31   : > { %p1744_p10 = pneg %p1743_p9  ;;  %p1750_p1 = por %p1749_p0, %p1748_p13 }
  0x33   : > { %p1751_p5 = pnand %p1750_p1, %p1744_p10 }
  0x35   : > { %1754 = shalt.err (!%p1751_p5)
}
  0x36   : > { %s1755_s26 = scalar_lea.vmem %s2098_s19, 256  ;;  %s1928_s22 = smov [#allocation2]  }
  0x37   : > { %p1756_p6 = scmp.ne.s32.totalorder %s2098_s19, %s1755_s26  ;;  %s1760_s17 = sshll.u32 %s1928_s22, 4  ;;  %s1761_s17 = int_to_ptr.vmem [resolvable:$false] %s1760_s17 }
  0x38   : > { %s1762_s10 = scalar_lea.vmem %s1761_s17, 512  ;;  %p1763_p12 = scmp.lt.s32.totalorder %s2098_s19, %s1761_s17 }
  0x39   : > { %p1758_p9 = pnand %p1756_p6, %p1742_p8  ;;  %p1764_p3 = scmp.lt.s32.totalorder %s1762_s10, %s1755_s26 }
  0x3b   : > { %p1759_p2 = pneg %p1758_p9  ;;  %p1765_p11 = por %p1764_p3, %p1763_p12 }
  0x3d   : > { %p1766_p13 = pnand %p1765_p11, %p1759_p2 }
  0x3f   : > { %1769 = shalt.err (!%p1766_p13)
}
  0x40   : > { %s2415_s25 = smov 64   ;;  %s1930_s20 = smov 4  }
  0x41   : > { %s2433_s26 = scalar_lea.sflag [#allocation3], %s2085_s16  ;;  %p351_p12 = scmp.lt.s32.totalorder %s1926_s15, 5 }
  0x42   : > { %1615 = dma.hbm_to_vmem [thread:$0]  (!%p2102_p4), %s2094_s23, 256, %s2098_s19, %s2433_s26, %s2415_s25, %s2415_s25, %s1930_s20  }
  0x43   : > { %s2434_s21 = sshll.u32 %s1922_s14, 8  ;;  %p2435_p2 = scmp.ge.s32.totalorder %s1926_s15, 1 }
  0x44   : > { %s2144_s10 = scalar_lea.hbm %s2398_s2, %s2434_s21  ;;  %s2437_s13 = sshll.u32 %s2085_s16, 4 }
  0x45   : > { %p2148_p5 = pnand %p2435_p2, %p351_p12  ;;  %s325_s29 = scalar_lea.vmem [#allocation5], %s2437_s13 }
  0x46   : > { %s332_s8 = sshll.u32 %s325_s29, 4  ;;  %s322_s19 = scalar_lea.sflag [#allocation6], %s2085_s16  ;;  %s2154_s8 = int_to_ptr.vmem [resolvable:$true] %s332_s8 }
  0x47   : > { %s1770_s23 = scalar_lea.hbm %s2144_s10, 256  ;;  %s1775_s22 = scalar_lea.hbm %s2398_s2, 512 }
  0x48   : > { %p1771_p10 = scmp.ne.s32.totalorder %s2144_s10, %s1770_s23  ;;  %p1776_p6 = scmp.lt.u32.totalorder %s2144_s10, %s2398_s2 }
  0x49   : > { %p1777_p9 = scmp.lt.u32.totalorder %s1775_s22, %s1770_s23  ;;  %p1779_p11 = scmp.lt.u32.totalorder %s1770_s23, %s2144_s10 }
  0x4a   : > { %p1773_p0 = pnand %p1771_p10, %p1742_p8 }
  0x4b   : > { %p1778_p3 = por %p1777_p9, %p1776_p6 }
  0x4c   : > { %p1774_p1 = pneg %p1773_p0 }
  0x4d   : > { %p1780_p13 = por %p1779_p11, %p1778_p3 }
  0x4f   : > { %p1781_p12 = pnand %p1780_p13, %p1774_p1 }
  0x51   : > { %1784 = shalt.err (!%p1781_p12)
}
  0x52   : > { %s1785_s29 = scalar_lea.vmem %s2154_s8, 256  ;;  %s1931_s13 = smov [#allocation5]  }
  0x53   : > { %p1786_p2 = scmp.ne.s32.totalorder %s2154_s8, %s1785_s29  ;;  %s1790_s26 = sshll.u32 %s1931_s13, 4  ;;  %s1791_s26 = int_to_ptr.vmem [resolvable:$false] %s1790_s26 }
  0x54   : > { %s1792_s25 = scalar_lea.vmem %s1791_s26, 512  ;;  %p1793_p7 = scmp.lt.s32.totalorder %s2154_s8, %s1791_s26 }
  0x55   : > { %p1788_p10 = pnand %p1786_p2, %p1742_p8  ;;  %p1794_p6 = scmp.lt.s32.totalorder %s1792_s25, %s1785_s29 }
  0x57   : > { %p1789_p0 = pneg %p1788_p10  ;;  %p1795_p9 = por %p1794_p6, %p1793_p7 }
  0x59   : > { %p1796_p3 = pnand %p1795_p9, %p1789_p0 }
  0x5b   : > { %1799 = shalt.err (!%p1796_p3)
}
  0x5c   : > { %s2438_s23 = smov 64   ;;  %355 = sbr.rel (%p2148_p5) target bundleno = 1451 (0x5ab), region = 52 }
  0x5d   : > { %1618 = dma.hbm_to_vmem [thread:$0]  (!%p2102_p4), %s2144_s10, 256, %s2154_s8, %s322_s19, %s2438_s23, %s2438_s23, %s1930_s20  }
  0x5e   : > { %s357_s21 = sand.u32 (!%p2148_p5), 1, %s1902_s9   ;;  %p2439_p7 = scmp.ne.s32.totalorder (!%p2148_p5), %s2425_s24, 0 }
  0x5f   : > { %s1466_s22 = sshll.u32 (!%p2148_p5), %s357_s21, 4  ;;  %s358_s17 = scalar_lea.sflag (!%p2148_p5), [#allocation3], %s357_s21 }
  0x60   : > { %s2188_s29 = scalar_lea.vmem (!%p2148_p5), [#allocation2], %s1466_s22 }
  0x63   : > { %1873 = dma.done.wait (%p2439_p7), %s358_s17, 256  }
  0x64   : > { %1875 = vsyncadd (%p2439_p7), %s358_s17, 4294967040  ;;  %s367_s18 = scalar_lea.sflag [#allocation6], %s357_s21  ;;  %s2194_s16 = scalar_lea.vmem [#allocation5], %s1466_s22 }
  0x65   : > { %1877 = dma.done.wait (%p2439_p7), %s367_s18, 256  }
  0x66   : > { %1879 = vsyncadd (%p2439_p7), %s367_s18, 4294967040  ;;  %p424_p4 = scmp.lt.s32.totalorder %s1914_s12, 1  ;;  %p426_p8 = scmp.lt.s32.totalorder %s1910_s11, 1  ;;  %v1932_v0 = vmov 0.0   ;;  %vm1933_vm0 = vmmov 0   ;;  %v1722_v1 = vld [vmem:[%s2400_s4] sm:$0xff]   ;;  %v525_v17 = vlaneseq }
  0x67   : > { %1526 = vmatprep.subr.bf16.mxu0 %v1932_v0  ;;  %1530 = vmatprep.mubr.msk.bf16.mxu0 %vm1933_vm0, %v1932_v0  ;;  %v1723_v2 = vld [vmem:[%s2400_s4 + $0x8] sm:$0xff]   ;;  %vm466_vm1 = vcmask 261120   ;;  %v1473_v5 = vld [vmem:[%s2401_s5] ss:$0 sm:$0xff]  ;;  %vm667_vm2 = vcmask 64512   ;;  %vm907_vm4 = vcmask 1043456  }
  0x68   : > { %s425_s1 = scalar_select %p424_p4, %s1914_s12, 1  ;;  %1534 = vmatprep.subr.bf16.mxu1 %v1932_v0  ;;  %1536 = vmatprep.mubr.msk.bf16.mxu1 %vm1933_vm0, %v1932_v0  ;;  %v660_v11 = vld [vmem:[%s2188_s29] sm:$0xf]  ;;  %v661_v12 = vld [vmem:[%s2188_s29 + $0x4] sm:$0xf]  ;;  %v526_v21 = vshrl.u32 %v525_v17, 7 }
  0x69   : > { %s427_s8 = scalar_select %p426_p8, %s1910_s11, 1  ;;  %1527 = vmatpush3.bf16.msra.mxu0 %v1722_v1  ;;  %v672_v13 = vsel %vm667_vm2, %v660_v11, 0  ;;  %v718_v14 = vsel %vm667_vm2, %v661_v12, 0  ;;  %v1937_v15 = vmov 1983009808  }
  0x6a   : > { %s1469_s24 = sshll.u32 %s425_s1, 1  ;;  %1528 = vmatprep.subr.bf16.mxu0 %v1932_v0  ;;  %s1934_s1 = smov 104   ;;  %1535 = vmatpush3.bf16.xpose.msra.mxu1 %v672_v13  ;;  %v523_v16 = vunpack.c.l.s4 %v1937_v15  ;;  %v1938_v18 = vmov 1934713408   ;;  %v662_v58 = vld [vmem:[%s2188_s29 + $0x8] sm:$0xf] }
  0x6b   : > { %s2210_s20 = sadd.s32 %s1469_s24, %s427_s8  ;;  %s1935_s8 = smov 120   ;;  %1546 = vmatprep.subr.bf16.mxu1 %v1932_v0  ;;  %v555_v19 = vunpack.c.l.s4 %v1938_v18  ;;  %v663_v59 = vld [vmem:[%s2188_s29 + $0xc] sm:$0xf]  ;;  %v764_v62 = vsel %vm667_vm2, %v662_v58, 0 }
  0x6c   : > { %s1470_s10 = sshll.u32 %s2210_s20, 3  ;;  %s1936_s24 = smov 112   ;;  %v524_v20 = vunpack.c.0.s8 %v523_v16  ;;  %v810_v63 = vsel %vm667_vm2, %v663_v59, 0 }
  0x6d   : > { %s431_s23 = scalar_lea.vmem %s2396_s0, %s1470_s10  ;;  %1529 = vmatpush3.bf16.msra.mxu0 %v1723_v2  ;;  %v556_v24 = vunpack.c.0.s8 %v555_v19  ;;  %s439_s13 = scalar_lea.vmem %s2399_s3, %s1470_s10 }
  0x6e   : > { %v441_v3 = vld [vmem:[%s431_s23] sm:$0xff]  ;;  %1540 = vmatprep.subr.bf16.mxu0 %v1932_v0  ;;  %v527_v25 = vsub.s32 %v524_v20, %v526_v21  ;;  %s421_s17 = sand.u32 1, %s1890_s28   ;;  %s2440_s20 = sld [smem:[#allocation20_spill]] }
  0x6f   : > { %v442_v4 = vpack.c.bf16 %v441_v3, %v441_v3  ;;  %v559_v31 = vsub.s32 %v556_v24, %v526_v21  ;;  %s1468_s18 = sshll.u32 %s421_s17, 3  ;;  %s1298_s26 = scalar_lea.sflag [#allocation4], %s421_s17 }
  0x70   : > { %p2441_p1 = scmp.ne.s32.totalorder %s2426_s30, 0  ;;  %s1939_s23 = smov [#allocation7]  }
  0x71   : > { %1531 = vmatmul.mubr.msk.bf16.vlgmr.msra.gmra.mrb[0].mxu0 %vm466_vm1, %v442_v4  ;;  %s1804_s21 = sshll.u32 %s1939_s23, 4  ;;  %s1805_s21 = int_to_ptr.vmem [resolvable:$false] %s1804_s21 }
  0x72   : > { %1542 = vmatprep.mubr.msk.bf16.mxu0 %vm1933_vm0, %v1932_v0  ;;  %s1806_s22 = scalar_lea.vmem %s1805_s21, 256 }
  0x76   : > { %1541 = vmatpush3.bf16.xpose.msra.mxu0 %v718_v14 }
  0x77   : > { %1552 = vmatprep.subr.bf16.mxu0 %v1932_v0 }
 0x144   : > { %v504_v6 = vpop.f32.mrb[0].mxu0 }
 0x145   : > { %v505_v7 = vadd.f32 %v1473_v5, %v504_v6  ;;  %v1532_v8 = vpop.f32.mrb[1].mxu0 }
 0x146   : > { %v507_v9 = vpop.f32.mrb[2].mxu0 }
 0x147   : > { %517 = vrot.lane.b32.xlu1 %v505_v7, %s1934_s1  ;;  %511 = vrot.lane.b32.xlu0 %v505_v7, %s1935_s8  ;;  %v1533_v10 = vpop.f32.mrb[3].mxu0  ;;  %v664_v9 = vld [vmem:[%s439_s13] sm:$0xff]  ;;  %s1493_s1 = sshll.u32 %s1914_s12, 1  ;;  %s423_s12 = scalar_lea.vmem [#allocation7], %s1468_s18 }
 0x148   : > { %vm665_vm3 = vcmp.eq.f32.partialorder %v664_v9, 0.0  ;;  %s1309_s8 = sadd.s32 %s1910_s11, %s1493_s1  ;;  %s1313_s13 = sshll.u32 %s423_s12, 4  ;;  %s2335_s13 = int_to_ptr.vmem [resolvable:$true] %s1313_s13 }
 0x149   : > { %v666_v10 = vsel %vm665_vm3, -1e+30, %v1932_v0  ;;  %s1494_s19 = sshll.u32 %s1309_s8, 7  ;;  %s1800_s25 = scalar_lea.vmem %s2335_s13, 128 }
 0x14a   : > { %s2333_s10 = scalar_lea.hbm %s2440_s20, %s1494_s19  ;;  %p1801_p5 = scmp.ne.s32.totalorder %s2335_s13, %s1800_s25 }
 0x14b   : > { %514 = vrot.lane.b32.xlu0 %v505_v7, %s1936_s24  ;;  %p1807_p12 = scmp.lt.s32.totalorder %s2335_s13, %s1805_s21  ;;  %p1808_p2 = scmp.lt.s32.totalorder %s1806_s22, %s1800_s25 }
 0x14c   : > { %p1802_p11 = pnand %p1801_p5, %p2441_p1 }
 0x14d   : > { %p1809_p10 = por %p1808_p2, %p1807_p12 }
 0x14e   : > { %p1803_p13 = pneg %p1802_p11 }
 0x150   : > { %p1810_p0 = pnand %p1809_p10, %p1803_p13 }
 0x1b9   : > { %v518_v22 = vpop.permute.xlu1 %517  ;;  %v512_v23 = vpop.permute.xlu0 %511 }
 0x1ba   : > { %v536_v26 = vcombine.low %v512_v23, %v518_v22  ;;  %v537_v27 = vcombine.high %v512_v23, %v518_v22 }
 0x1bc   : > { %v544_v32 = vrot.slane %v536_v26, %v527_v25  ;;  %v551_v33 = vrot.slane %v537_v27, %v527_v25 }
 0x1bd   : > { %v515_v28 = vpop.permute.xlu0 %514 }
 0x1be   : > { %v520_v29 = vcombine.low %v505_v7, %v515_v28  ;;  %v521_v30 = vcombine.high %v505_v7, %v515_v28 }
 0x1c0   : > { %v528_v34 = vrot.slane %v520_v29, %v527_v25  ;;  %v535_v35 = vrot.slane %v521_v30, %v527_v25 }
 0x1c2   : > { %v552_v36 = vcombine.low %v528_v34, %v544_v32  ;;  %v553_v37 = vcombine.high %v528_v34, %v544_v32  ;;  %v568_v38 = vcombine.low %v535_v35, %v551_v33  ;;  %v569_v39 = vcombine.high %v535_v35, %v551_v33 }
 0x1c4   : > { %v560_v40 = vrot.slane %v552_v36, %v559_v31  ;;  %v567_v41 = vrot.slane %v553_v37, %v559_v31  ;;  %v576_v42 = vrot.slane %v568_v38, %v559_v31  ;;  %v583_v43 = vrot.slane %v569_v39, %v559_v31 }
 0x1c6   : > { %v588_v44 = vcombine.low %v560_v40, %v567_v41  ;;  %v1477_v45 = vcombine.high %v560_v40, %v567_v41  ;;  %v604_v46 = vcombine.low %v576_v42, %v583_v43  ;;  %v1478_v47 = vcombine.high %v576_v42, %v583_v43 }
 0x1c8   : > { %v595_v48 = vrot.slane %v588_v44, %v527_v25  ;;  %v603_v49 = vrot.slane %v1477_v45, %v527_v25  ;;  %v611_v50 = vrot.slane %v604_v46, %v527_v25  ;;  %v619_v51 = vrot.slane %v1478_v47, %v527_v25 }
 0x1ca   : > { %v620_v52 = vcombine.low %v595_v48, %v603_v49  ;;  %v636_v53 = vcombine.low %v611_v50, %v619_v51  ;;  %v621_v54 = vcombine.high %v595_v48, %v603_v49  ;;  %v637_v55 = vcombine.high %v611_v50, %v619_v51 }
 0x1cc   : > { %v628_v56 = vrot.slane %v620_v52, %v559_v31  ;;  %v644_v57 = vrot.slane %v636_v53, %v559_v31  ;;  %v635_v3 = vrot.slane %v621_v54, %v559_v31  ;;  %v651_v4 = vrot.slane %v637_v55, %v559_v31  ;;  %v900_v55 = vld [vmem:[%s2194_s16] sm:$0xf] }
 0x1ce   : > { %v652_v60 = vcombine.low %v628_v56, %v644_v57  ;;  %v653_v61 = vcombine.high %v628_v56, %v644_v57  ;;  %v654_v5 = vcombine.low %v635_v3, %v651_v4  ;;  %v655_v6 = vcombine.high %v635_v3, %v651_v4  ;;  %v901_v56 = vld [vmem:[%s2194_s16 + $0x4] sm:$0xf]  ;;  %v903_v4 = vld [vmem:[%s2194_s16 + $0xc] sm:$0xf] }
 0x1cf   : > { %v909_v57 = vsel %vm907_vm4, %v900_v55, 0  ;;  %v955_v58 = vsel %vm907_vm4, %v901_v56, 0  ;;  %v1047_v9 = vsel %vm907_vm4, %v903_v4, 0 }
 0x1d0   : > { %v656_v1 = vpack.c.bf16 %v652_v60, %v652_v60  ;;  %v657_v2 = vpack.c.bf16 %v653_v61, %v653_v61  ;;  %v658_v7 = vpack.c.bf16 %v654_v5, %v654_v5  ;;  %v659_v8 = vpack.c.bf16 %v655_v6, %v655_v6 }
 0x1d2   : > { %1537 = vmatmul.mubr.msk.bf16.vlgmr.msra.gmra.mrb[0].mxu1 %vm667_vm2, %v656_v1  ;;  %1543 = vmatmul.mubr.msk.bf16.vlgmr.msra.gmra.mrb[4].mxu0 %vm667_vm2, %v657_v2  ;;  %v902_v1 = vld [vmem:[%s2194_s16 + $0x8] sm:$0xf] }
 0x1d3   : > { %1547 = vmatpush3.bf16.xpose.msra.mxu1 %v764_v62  ;;  %1553 = vmatpush3.bf16.xpose.msra.mxu0 %v810_v63 }
 0x1d4   : > { %1548 = vmatprep.mubr.msk.bf16.mxu1 %vm1933_vm0, %v1932_v0  ;;  %1554 = vmatprep.mubr.msk.bf16.mxu0 %vm1933_vm0, %v1932_v0 }
 0x1d5   : > { %1558 = vmatprep.subr.bf16.mxu1 %v1932_v0  ;;  %1564 = vmatprep.subr.bf16.mxu0 %v1932_v0 }
 0x1da   : > { %1549 = vmatmul.mubr.msk.bf16.vlgmr.msra.gmra.mrb[4].mxu1 %vm667_vm2, %v658_v7  ;;  %1555 = vmatmul.mubr.msk.bf16.vlgmr.msra.gmra.mrb[8].mxu0 %vm667_vm2, %v659_v8  ;;  %v1001_v7 = vsel %vm907_vm4, %v902_v1, 0 }
 0x1db   : > { %1560 = vmatprep.mubr.msk.bf16.mxu1 %vm1933_vm0, %v1932_v0  ;;  %1566 = vmatprep.mubr.msk.bf16.mxu0 %vm1933_vm0, %v1932_v0 }
 0x1dc   : > { %1559 = vmatpush3.bf16.msra.mxu1 %v909_v57  ;;  %1565 = vmatpush3.bf16.msra.mxu0 %v955_v58 }
 0x1dd   : > { %1570 = vmatprep.subr.bf16.mxu1 %v1932_v0  ;;  %1576 = vmatprep.subr.bf16.mxu0 %v1932_v0 }
 0x2a5   : > { %v708_v11 = vpop.f32.mrb[0].mxu1  ;;  %v754_v12 = vpop.f32.mrb[4].mxu0 }
 0x2a6   : > { %v709_v13 = vadd.f32 %v708_v11, %v666_v10  ;;  %v755_v14 = vadd.f32 %v754_v12, %v666_v10  ;;  %v1538_v15 = vpop.f32.mrb[1].mxu1  ;;  %v1544_v16 = vpop.f32.mrb[5].mxu0  ;;  %v1093_v11 = vld [vmem:[%s2402_s6] sm:$0xf] }
 0x2a7   : > { %v711_v17 = vpop.f32.mrb[2].mxu1  ;;  %v757_v18 = vpop.f32.mrb[6].mxu0 }
 0x2a8   : > { %v1539_v19 = vpop.f32.mrb[3].mxu1  ;;  %v1545_v20 = vpop.f32.mrb[7].mxu0  ;;  %v852_v21 = vsel %vm667_vm2, %v709_v13, -inf  ;;  %v855_v22 = vsel %vm667_vm2, %v755_v14, -inf  ;;  %v1101_v17 = vsel %vm907_vm4, %v1093_v11, 0 }
 0x2a9   : > { %853 = vmax.xlane.f32.xlu1 %v852_v21  ;;  %856 = vmax.xlane.f32.xlu0 %v855_v22  ;;  %v1095_v20 = vld [vmem:[%s2402_s6 + $0x8] sm:$0xf]  ;;  %v1096_v21 = vld [vmem:[%s2402_s6 + $0xc] sm:$0xf] }
 0x2ad   : > { %v800_v23 = vpop.f32.mrb[4].mxu1  ;;  %v846_v24 = vpop.f32.mrb[8].mxu0 }
 0x2ae   : > { %v801_v25 = vadd.f32 %v800_v23, %v666_v10  ;;  %v847_v26 = vadd.f32 %v846_v24, %v666_v10  ;;  %v1550_v27 = vpop.f32.mrb[5].mxu1  ;;  %v1556_v28 = vpop.f32.mrb[9].mxu0 }
 0x2af   : > { %v803_v29 = vpop.f32.mrb[6].mxu1  ;;  %v849_v30 = vpop.f32.mrb[10].mxu0 }
 0x2b0   : > { %v1551_v31 = vpop.f32.mrb[7].mxu1  ;;  %v1557_v32 = vpop.f32.mrb[11].mxu0  ;;  %v858_v33 = vsel %vm667_vm2, %v801_v25, -inf  ;;  %v861_v34 = vsel %vm667_vm2, %v847_v26, -inf  ;;  %v1239_v30 = vsel %vm907_vm4, %v1096_v21, 0 }
 0x2b1   : > { %859 = vmax.xlane.f32.xlu0 %v858_v33  ;;  %862 = vmax.xlane.f32.xlu1 %v861_v34 }
 0x336   : > { %v854_v35 = vpop.xlane.xlu1 %853  ;;  %v857_v36 = vpop.xlane.xlu0 %856 }
 0x337   : > { %v864_v37 = vsub.f32 %v709_v13, %v854_v35  ;;  %v865_v38 = vsub.f32 %v755_v14, %v857_v36  ;;  %v1094_v14 = vld [vmem:[%s2402_s6 + $0x4] sm:$0xf] }
 0x338   : > { %v1147_v19 = vsel %vm907_vm4, %v1094_v14, 0 }
 0x339   : > { %v868_v39 = vmul.f32 1.442695, %v864_v37  ;;  %v870_v40 = vmul.f32 1.442695, %v865_v38 }
 0x33b   : > { %1724 = vpow2.f32 %v868_v39 }
 0x33c   : > { %1726 = vpow2.f32 %v870_v40 }
 0x33e   : > { %v860_v41 = vpop.xlane.xlu0 %859  ;;  %v863_v42 = vpop.xlane.xlu1 %862 }
 0x33f   : > { %v866_v43 = vsub.f32 %v801_v25, %v860_v41  ;;  %v867_v44 = vsub.f32 %v847_v26, %v863_v42  ;;  %v1193_v26 = vsel %vm907_vm4, %v1095_v20, 0 }
 0x341   : > { %v872_v45 = vmul.f32 1.442695, %v866_v43  ;;  %v874_v46 = vmul.f32 1.442695, %v867_v44 }
 0x343   : > { %1728 = vpow2.f32 %v872_v45 }
 0x344   : > { %1730 = vpow2.f32 %v874_v46 }
 0x345   : > { %v1725_v47 = vpop.eup %1724 }
 0x346   : > { %v1727_v48 = vpop.eup %1726  ;;  %v876_v49 = vsel %vm667_vm2, %v1725_v47, 0.0 }
 0x347   : > { %877 = vadd.xlane.f32.xlu0 %v876_v49  ;;  %v879_v50 = vsel %vm667_vm2, %v1727_v48, 0.0 }
 0x348   : > { %880 = vadd.xlane.f32.xlu1 %v879_v50 }
 0x34d   : > { %v1729_v51 = vpop.eup %1728 }
 0x34e   : > { %v1731_v52 = vpop.eup %1730  ;;  %v882_v53 = vsel %vm667_vm2, %v1729_v51, 0.0 }
 0x34f   : > { %883 = vadd.xlane.f32.xlu0 %v882_v53  ;;  %v885_v54 = vsel %vm667_vm2, %v1731_v52, 0.0 }
 0x350   : > { %886 = vadd.xlane.f32.xlu1 %v885_v54 }
 0x3d4   : > { %v878_v59 = vpop.xlane.xlu0 %877 }
 0x3d5   : > { %1732 = vrcp.f32 %v878_v59  ;;  %v881_v60 = vpop.xlane.xlu1 %880  ;;  %v1491_v59 = vld [vmem:[%s2403_s7] ss:$0 sm:$0xff] }
 0x3d6   : > { %1734 = vrcp.f32 %v881_v60 }
 0x3dc   : > { %v884_v61 = vpop.xlane.xlu0 %883 }
 0x3dd   : > { %1736 = vrcp.f32 %v884_v61  ;;  %v887_v62 = vpop.xlane.xlu1 %886 }
 0x3de   : > { %1738 = vrcp.f32 %v887_v62 }
 0x3df   : > { %v1733_v63 = vpop.eup %1732 }
 0x3e0   : > { %v1735_v2 = vpop.eup %1734  ;;  %v892_v3 = vmul.f32 %v1733_v63, %v1725_v47 }
 0x3e1   : > { %v893_v5 = vmul.f32 %v1735_v2, %v1727_v48 }
 0x3e2   : > { %v896_v6 = vpack.c.bf16 %v892_v3, %v892_v3 }
 0x3e3   : > { %v897_v8 = vpack.c.bf16 %v893_v5, %v893_v5 }
 0x3e4   : > { %1561 = vmatmul.mubr.msk.bf16.vlgmr.msra.gmra.mrb[8].mxu1 %vm667_vm2, %v896_v6 }
 0x3e5   : > { %1567 = vmatmul.mubr.msk.bf16.vlgmr.msra.gmra.mrb[12].mxu0 %vm667_vm2, %v897_v8  ;;  %1571 = vmatpush3.bf16.msra.mxu1 %v1001_v7 }
 0x3e6   : > { %1577 = vmatpush3.bf16.msra.mxu0 %v1047_v9  ;;  %1572 = vmatprep.mubr.msk.bf16.mxu1 %vm1933_vm0, %v1932_v0 }
 0x3e7   : > { %v1737_v10 = vpop.eup %1736  ;;  %1578 = vmatprep.mubr.msk.bf16.mxu0 %vm1933_vm0, %v1932_v0  ;;  %1582 = vmatprep.subr.bf16.mxu1 %v1932_v0 }
 0x3e8   : > { %v1739_v12 = vpop.eup %1738  ;;  %v894_v13 = vmul.f32 %v1737_v10, %v1729_v51  ;;  %1588 = vmatprep.subr.bf16.mxu0 %v1932_v0 }
 0x3e9   : > { %v895_v15 = vmul.f32 %v1739_v12, %v1731_v52 }
 0x3ea   : > { %v898_v16 = vpack.c.bf16 %v894_v13, %v894_v13 }
 0x3eb   : > { %v899_v18 = vpack.c.bf16 %v895_v15, %v895_v15 }
 0x3ec   : > { %1573 = vmatmul.mubr.msk.bf16.vlgmr.msra.gmra.mrb[12].mxu1 %vm667_vm2, %v898_v16 }
 0x3ed   : > { %1579 = vmatmul.mubr.msk.bf16.vlgmr.msra.gmra.mrb[16].mxu0 %vm667_vm2, %v899_v18  ;;  %1583 = vmatpush3.bf16.msra.mxu1 %v1101_v17 }
 0x3ee   : > { %1589 = vmatpush3.bf16.msra.mxu0 %v1147_v19  ;;  %1584 = vmatprep.mubr.msk.bf16.mxu1 %vm1933_vm0, %v1932_v0 }
 0x3ef   : > { %1590 = vmatprep.mubr.msk.bf16.mxu0 %vm1933_vm0, %v1932_v0  ;;  %1594 = vmatprep.subr.bf16.mxu1 %v1932_v0 }
 0x3f0   : > { %1600 = vmatprep.subr.bf16.mxu0 %v1932_v0 }
 0x4b7   : > { %v945_v22 = vpop.f32.mrb[8].mxu1 }
 0x4b8   : > { %v1089_v23 = vpack.c.bf16 %v945_v22, %v945_v22  ;;  %v991_v24 = vpop.f32.mrb[12].mxu0  ;;  %v1562_v25 = vpop.f32.mrb[9].mxu1 }
 0x4b9   : > { %v1090_v27 = vpack.c.bf16 %v991_v24, %v991_v24  ;;  %v1568_v28 = vpop.f32.mrb[13].mxu0  ;;  %v948_v29 = vpop.f32.mrb[10].mxu1 }
 0x4ba   : > { %v994_v31 = vpop.f32.mrb[14].mxu0  ;;  %v1563_v32 = vpop.f32.mrb[11].mxu1  ;;  %1585 = vmatmul.mubr.msk.bf16.vlgmr.msra.gmra.mrb[16].mxu1 %vm667_vm2, %v1089_v23 }
 0x4bb   : > { %v1569_v33 = vpop.f32.mrb[15].mxu0  ;;  %1591 = vmatmul.mubr.msk.bf16.vlgmr.msra.gmra.mrb[20].mxu0 %vm667_vm2, %v1090_v27  ;;  %1595 = vmatpush3.bf16.msra.mxu1 %v1193_v26 }
 0x4bc   : > { %1601 = vmatpush3.bf16.msra.mxu0 %v1239_v30  ;;  %1596 = vmatprep.mubr.msk.bf16.mxu1 %vm1933_vm0, %v1932_v0 }
 0x4bd   : > { %1602 = vmatprep.mubr.msk.bf16.mxu0 %vm1933_vm0, %v1932_v0 }
 0x4bf   : > { %v1037_v34 = vpop.f32.mrb[12].mxu1 }
 0x4c0   : > { %v1091_v35 = vpack.c.bf16 %v1037_v34, %v1037_v34  ;;  %v1083_v36 = vpop.f32.mrb[16].mxu0  ;;  %v1574_v37 = vpop.f32.mrb[13].mxu1 }
 0x4c1   : > { %v1092_v38 = vpack.c.bf16 %v1083_v36, %v1083_v36  ;;  %v1580_v39 = vpop.f32.mrb[17].mxu0  ;;  %v1040_v40 = vpop.f32.mrb[14].mxu1 }
 0x4c2   : > { %v1086_v41 = vpop.f32.mrb[18].mxu0  ;;  %v1575_v42 = vpop.f32.mrb[15].mxu1  ;;  %1597 = vmatmul.mubr.msk.bf16.vlgmr.msra.gmra.mrb[20].mxu1 %vm667_vm2, %v1091_v35 }
 0x4c3   : > { %v1581_v43 = vpop.f32.mrb[19].mxu0  ;;  %1603 = vmatmul.mubr.msk.bf16.vlgmr.msra.gmra.mrb[24].mxu0 %vm667_vm2, %v1092_v38 }
 0x58d   : > { %v1137_v44 = vpop.f32.mrb[16].mxu1 }
 0x58e   : > { %v1281_v0 = vsel %vm466_vm1, %v1137_v44, 0.0  ;;  %v1183_v45 = vpop.f32.mrb[20].mxu0  ;;  %v1586_v46 = vpop.f32.mrb[17].mxu1 }
 0x58f   : > { %v1282_v47 = vsel %vm466_vm1, %v1183_v45, 0.0  ;;  %v1592_v48 = vpop.f32.mrb[21].mxu0  ;;  %v1140_v49 = vpop.f32.mrb[18].mxu1 }
 0x590   : > { %v1283_v50 = vadd.f32 %v1282_v47, %v1281_v0  ;;  %v1186_v51 = vpop.f32.mrb[22].mxu0  ;;  %v1587_v52 = vpop.f32.mrb[19].mxu1 }
 0x591   : > { %v1593_v53 = vpop.f32.mrb[23].mxu0 }
 0x595   : > { %v1229_v54 = vpop.f32.mrb[20].mxu1 }
 0x596   : > { %v1284_v55 = vsel %vm466_vm1, %v1229_v54, 0.0  ;;  %v1275_v56 = vpop.f32.mrb[24].mxu0  ;;  %v1598_v57 = vpop.f32.mrb[21].mxu1 }
 0x597   : > { %v1285_v58 = vadd.f32 %v1284_v55, %v1283_v50  ;;  %v1604_v60 = vpop.f32.mrb[25].mxu0  ;;  %v1232_v61 = vpop.f32.mrb[22].mxu1  ;;  %v1286_v62 = vsel %vm466_vm1, %v1275_v56, 0.0 }
 0x598   : > { %v1278_v63 = vpop.f32.mrb[26].mxu0  ;;  %v1599_v1 = vpop.f32.mrb[23].mxu1 }
 0x599   : > { %v1287_v2 = vadd.f32 %v1286_v62, %v1285_v58  ;;  %v1605_v3 = vpop.f32.mrb[27].mxu0 }
 0x59b   : > { %v1295_v4 = vadd.f32 %v1491_v59, %v1287_v2 }
 0x59d   : > { %1296 = vst.msk [vmem:[%s423_s12] sm:$0xff] %vm466_vm1, %v1295_v4 }
 0x59e   : > { %1813 = shalt.err (!%p1810_p0)
}
 0x59f   : > { %s1814_s17 = scalar_lea.hbm %s2333_s10, 128  ;;  %s1818_s8 = scalar_lea.hbm %s2440_s20, 512 }
 0x5a0   : > { %p1815_p6 = scmp.ne.s32.totalorder %s2333_s10, %s1814_s17  ;;  %p1819_p7 = scmp.lt.u32.totalorder %s2333_s10, %s2440_s20 }
 0x5a1   : > { %p1820_p4 = scmp.lt.u32.totalorder %s1818_s8, %s1814_s17  ;;  %p1822_p5 = scmp.lt.u32.totalorder %s1814_s17, %s2333_s10 }
 0x5a2   : > { %p1816_p9 = pnand %p1815_p6, %p2441_p1 }
 0x5a3   : > { %p1821_p8 = por %p1820_p4, %p1819_p7 }
 0x5a4   : > { %p1817_p3 = pneg %p1816_p9 }
 0x5a5   : > { %p1823_p11 = por %p1822_p5, %p1821_p8 }
 0x5a7   : > { %p1824_p13 = pnand %p1823_p11, %p1817_p3 }
 0x5a9   : > { %1827 = shalt.err (!%p1824_p13)
}
 0x5aa   : > { %1610 = dma.vmem_to_hbm [thread:$0]  (%p2441_p1), %s2335_s13, 128, %s2333_s10, %s1298_s26  }
 0x5ab PF: > { %s2442_s19 = sld [smem:[#allocation18_spill]]  ;;  %p1624_p12 = scmp.ge.s32.totalorder %s1926_s15, 2 }
 0x5ac   : > { %s1325_s12 = sand.u32 1, %s1886_s27  }
 0x5ad   : > { %s1326_s11 = scalar_lea.sflag [#allocation4], %s1325_s12 }
 0x5b1   : > { %p2443_p2 = scmp.ne.s32.totalorder %s2442_s19, 0 }
 0x5b3   : > { %p1620_p10 = pnand %p1624_p12, %p2443_p2 }
 0x5b5   : > { %1881 = dma.done.wait (!%p1620_p10), %s1326_s11, 128  }
 0x5b6   : > { %1883 = vsyncadd (!%p1620_p10), %s1326_s11, 4294967168  ;;  %s27_s15 = sadd.s32 1, %s1926_s15   ;;  %s2444_s16 = sld [smem:[#allocation11_spill]] }
 0x5b7   : > { %p24_p0 = scmp.ge.s32.totalorder %s27_s15, 6   ;;  %s2445_s29 = sld [smem:[#allocation17_spill]] }
 0x5b8   : > { %s2446_s25 = sld [smem:[#allocation12_spill]]  ;;  %s2447_s10 = sld [smem:[#allocation16_spill]] }
 0x5b9   : > { %s2448_s11 = sld [smem:[#allocation13_spill]]  ;;  %s2449_s13 = sld [smem:[#allocation14_spill]] }
 0x5ba   : > { %s2450_s26 = sld [smem:[#allocation15_spill]]  ;;  %s2451_s27 = smov %s1890_s28 }
 0x5bb   : > { %s2453_s30 = smov %s1902_s9  ;;  %s2455_s12 = smov %s1922_s14 }
 0x5bc   : > { %s2452_s28 = smov %s2444_s16  ;;  %26 = sbr.rel (!%p24_p0) target bundleno = 14 (0xe), region = 116 }
 0x5be   : > { %s2454_s9 = smov %s2446_s25 }
 0x5c0   : > { %s2456_s14 = smov %s2450_s26 }
 0x5c3   :  { %1331 = vsyncpa [#allocation3], 1 }
 0x5c4   :  { %1333 = vsyncpa [#allocation3 + $0x1], 1 }
 0x5c5   :  { %1334 = vsyncpa [#allocation6], 1 }
 0x5c6   :  { %1336 = vsyncpa [#allocation6 + $0x1], 1 }
 0x5c7   :  { %1337 = vsyncpa [#allocation4], 1 }
 0x5c8   :  { %1339 = vsyncpa [#allocation4 + $0x1], 1 }

</bundles_post_ra>
